<compile_context>
chip_gen: v5e
topology: v5e:2x2
jax: 0.10.0
libtpu: 0.0.40
codegen_flags: <defaults>
</compile_context>

<pallas_src>
import functools

import jax
import jax.numpy as jnp
import numpy as np
from jax import lax
from jax.experimental import pallas as pl
from jax.experimental.pallas import tpu as pltpu


def _round_up(a, b):
    return ((a + b - 1) // b) * b


def _delta_kernel(x_ref, o_ref, *, half, inv_half):
    """Compute delta for one block of batch rows.

    x_ref: (TB, S, D) block of the input.
    o_ref: (TB, D) output rows for the same batch slice.
    """
    x = x_ref[...].astype(jnp.float32)                     # stream tile, f32 accumulate
    # Deterministic Delta weight: -2/S for s < S//2, +2/S otherwise.
    s_idx = lax.broadcasted_iota(jnp.int32, x.shape, 1)    # sequence index (sublane axis)
    w = jnp.where(s_idx < half, jnp.float32(-inv_half), jnp.float32(inv_half))
    out = jnp.sum(x * w, axis=1)                           # VPU mul + cross-sublane reduce
    o_ref[...] = out.astype(o_ref.dtype)


def delta_forward(x, *, target_tile_bytes=4 * 1024 * 1024,
                  vmem_limit_bytes=32 * 1024 * 1024):
    """Pallas Delta forward: x [B, S, D] float -> [B, D].

    Equivalent to einsum('bsd,s->bd', x, w) with the module's fixed +/-(2/S)
    weight pattern baked into the kernel.
    """
    B, S, D = x.shape
    half = S // 2
    # Match the float32 arithmetic of the PyTorch init: 1.0 / (S / 2.0).
    inv_half = float(np.float32(1.0) / np.float32(S / 2.0))

    # Batch rows per grid step: size the streamed x tile to ~target_tile_bytes
    # (double-buffered by the pipeline -> ~2x that in VMEM), far above the
    # per-step-overhead regime but comfortably inside scoped VMEM on
    # v5e (16 MiB default, raised below), v6e (32 MiB) and v7x (64 MiB phys).
    row_bytes = S * D * x.dtype.itemsize
    tb_target = max(1, target_tile_bytes // row_bytes)
    if tb_target >= B:
        TB = B                      # single grid step; block == full batch extent
        B_pad = B
    else:
        TB = max(8, (tb_target // 8) * 8)   # keep out-block sublane dim a multiple of 8
        B_pad = _round_up(B, TB)

    if B_pad != B:
        x = jnp.pad(x, ((0, B_pad - B), (0, 0), (0, 0)))

    n_steps = B_pad // TB
    kernel = functools.partial(_delta_kernel, half=half, inv_half=inv_half)

    out = pl.pallas_call(
        kernel,
        out_shape=jax.ShapeDtypeStruct((B_pad, D), x.dtype),
        grid_spec=pltpu.PrefetchScalarGridSpec(
            num_scalar_prefetch=0,
            grid=(n_steps,),
            in_specs=[
                # (TB, S, D): last two dims are the full array extents.
                pl.BlockSpec((TB, S, D), lambda i: (i, 0, 0)),
            ],
            out_specs=pl.BlockSpec((TB, D), lambda i: (i, 0)),
        ),
        compiler_params=pltpu.CompilerParams(
            # Batch axis is embarrassingly parallel: lets megacore / v7x's two
            # TensorCores split grid steps.
            dimension_semantics=("parallel",),
            vmem_limit_bytes=vmem_limit_bytes,
        ),
    )(x)

    return out[:B] if B_pad != B else out


def make_delta_weight(seqL):
    # Deterministic parameter init, exactly as in Delta.__init__ (used only for
    # the pure-JAX reference; the kernel bakes this pattern in).
    w = np.ones(seqL, np.float32) / (seqL / 2.0)
    w[: seqL // 2] *= -1
    return jnp.asarray(w)


if __name__ == "__main__":
    # Small shapes consistent with the module: batch=2, seqL=8, inDims=32.
    B, seqL, inDims = 2, 8, 32
    key = jax.random.PRNGKey(0)
    x = jax.random.normal(key, (B, seqL, inDims), dtype=jnp.float32)
    weight = make_delta_weight(seqL)

    out = jax.block_until_ready(delta_forward(x))
    ref = jnp.einsum("bsd,s->bd", x, weight)
    assert out.shape == (B, inDims)
    np.testing.assert_allclose(np.asarray(out), np.asarray(ref), rtol=1e-5, atol=1e-5)

    # Also exercise the multi-step, padded batch-blocking path (B not a
    # multiple of the block) with a tiny tile budget to force several steps.
    B2 = 100
    x2 = jax.random.normal(jax.random.PRNGKey(1), (B2, seqL, inDims), dtype=jnp.float32)
    out2 = jax.block_until_ready(delta_forward(x2, target_tile_bytes=32 * 1024))
    ref2 = jnp.einsum("bsd,s->bd", x2, weight)
    assert out2.shape == (B2, inDims)
    np.testing.assert_allclose(np.asarray(out2), np.asarray(ref2), rtol=1e-5, atol=1e-5)

    print("KERNEL_OK")
</pallas_src>

<mosaic_0001>
module attributes {stable_mosaic.version = 11 : i64} {
  func.func @_delta_kernel(%arg0: i32, %arg1: memref<2x8x32xf32, #tpu.memory_space<vmem>>, %arg2: memref<2x32xf32, #tpu.memory_space<vmem>>) attributes {dimension_semantics = [#tpu.dimension_semantics<parallel>], iteration_bounds = array<i64: 1>, scalar_prefetch = 0 : i64, scratch_operands = 0 : i64, tpu.core_type = #tpu.core_type<tc>, window_params = [{transform_indices = @transform_0, window_bounds = array<i64: 2, 8, 32>}, {transform_indices = @transform_1, window_bounds = array<i64: 2, 32>}]} {
    %c0 = arith.constant 0 : index
    %c0_0 = arith.constant 0 : index
    %c0_1 = arith.constant 0 : index
    %0 = vector.load %arg1[%c0, %c0_0, %c0_1] : memref<2x8x32xf32, #tpu.memory_space<vmem>>, vector<2x8x32xf32>
    %1 = tpu.iota {dimensions = array<i32: 1>} : vector<2x8x32xi32>
    %c4_i32 = arith.constant 4 : i32
    %2 = vector.broadcast %c4_i32 : i32 to vector<2x8x32xi32>
    %3 = arith.cmpi slt, %1, %2 : vector<2x8x32xi32>
    %cst = arith.constant -2.500000e-01 : f32
    %cst_2 = arith.constant 2.500000e-01 : f32
    %4 = vector.broadcast %cst : f32 to vector<2x8x32xf32>
    %5 = vector.broadcast %cst_2 : f32 to vector<2x8x32xf32>
    %6 = arith.select %3, %4, %5 : vector<2x8x32xi1>, vector<2x8x32xf32>
    %7 = arith.mulf %0, %6 : vector<2x8x32xf32>
    %cst_3 = arith.constant dense<0.000000e+00> : vector<2x32xf32>
    %8 = vector.multi_reduction <add>, %7, %cst_3 [1] : vector<2x8x32xf32> to vector<2x32xf32>
    %c0_4 = arith.constant 0 : index
    %c0_5 = arith.constant 0 : index
    %9 = vector.load %arg2[%c0_4, %c0_5] : memref<2x32xf32, #tpu.memory_space<vmem>>, vector<2x32xf32>
    tpu.vector_store %arg2[%c0_4, %c0_5], %8 {strides = array<i32>} : memref<2x32xf32, #tpu.memory_space<vmem>>, vector<2x32xf32>,
    return
  }
  func.func @transform_0(%arg0: i32) -> (i32, i32, i32) {
    %c0_i32 = arith.constant 0 : i32
    %c0_i32_0 = arith.constant 0 : i32
    %c0_i32_1 = arith.constant 0 : i32
    return %arg0, %c0_i32, %c0_i32_0 : i32, i32, i32
  }
  func.func @transform_1(%arg0: i32) -> (i32, i32) {
    %c0_i32 = arith.constant 0 : i32
    %c0_i32_0 = arith.constant 0 : i32
    return %arg0, %c0_i32 : i32, i32
  }
}

</mosaic_0001>

<bundles_post_ra>
// kernel: tpu_custom_call.1
= control target key start
LH: loop header
LB: loop body
LE: loop exit
PB: predicated region body
PF: predicated region fallthrough
CT: control target
= control target key end

     0   :  { %6 = vsyncpa [#allocation3], 0  ;;  %s150_s0 = inlined_call_operand.hbm [shape: f32[2,8,32], index: 0, kind: input, shape index: {}]   ;;  %s151_s1 = inlined_call_operand.hbm [shape: f32[2,32], index: 1, kind: output, shape index: {}]  }
   0x1   :  { %7 = vsyncpa [#allocation4], 0  ;;  %s12_s8 = sshll.u32 %s150_s0, 4  ;;  %s129_s9 = smov [#allocation2]   ;;  %s13_s8 = int_to_ptr.hbm [resolvable:$true] %s12_s8 }
   0x2   :  { %s14_s10 = sshll.u32 %s129_s9, 4  ;;  %s130_s11 = smov 128   ;;  %s15_s10 = int_to_ptr.vmem [resolvable:$true] %s14_s10 }
   0x3   :  { %s131_s12 = smov 8  }
   0x4   :  { %20 = dma.hbm_to_vmem [thread:$0]  %s13_s8, 256, %s15_s10, [#allocation3], %s130_s11, %s130_s11, %s131_s12  }
   0x5   :  { %125 = dma.done.wait [#allocation3], 256  }
   0x6   :  { %126 = vsyncadd [#allocation3], 4294967040  ;;  %v27_v0 = vlaneseq  ;;  %v132_v2 = vmov 0.25   ;;  %v25_v4 = vld [vmem:[#allocation2] sm:$0xff]  ;;  %v26_v5 = vld [vmem:[#allocation2 + $0x8] sm:$0xff]  ;;  %vm33_vm1 = vcmask 261120  }
   0x7   :  { %s133_s0 = smov [#allocation5]   ;;  %s62_s16 = sshll.u32 %s151_s1, 4  ;;  %vm50_vm2 = vcmask 1041409   ;;  %vm53_vm3 = vcmask 254976   ;;  %s63_s16 = int_to_ptr.hbm [resolvable:$true] %s62_s16 }
   0x8   :  { %v28_v1 = vshrl.u32 %v27_v0, 7  ;;  %s60_s13 = sshll.u32 %s133_s0, 4  ;;  %s61_s13 = int_to_ptr.vmem [resolvable:$true] %s60_s13 }
   0xa   :  { %vm29_vm0 = vcmp.lt.s32.totalorder %v28_v1, 4 }
   0xb   :  { %v30_v3 = vsel %vm29_vm0, -0.25, %v132_v2 }
   0xc   :  { %v31_v6 = vmul.f32 %v30_v3, %v25_v4  ;;  %v32_v7 = vmul.f32 %v30_v3, %v26_v5 }
   0xe   :  { %v34_v8 = vsel %vm33_vm1, %v31_v6, 0.0  ;;  %v41_v9 = vsel %vm33_vm1, %v32_v7, 0.0 }
   0xf   :  { %v35_v10 = vrot.slane %v34_v8, 4  ;;  %v42_v11 = vrot.slane %v41_v9, 4 }
  0x11   :  { %v36_v12 = vadd.f32 %v35_v10, %v34_v8  ;;  %v43_v13 = vadd.f32 %v42_v11, %v41_v9 }
  0x13   :  { %v37_v14 = vrot.slane %v36_v12, 2  ;;  %v44_v15 = vrot.slane %v43_v13, 2 }
  0x15   :  { %v38_v16 = vadd.f32 %v37_v14, %v36_v12  ;;  %v45_v17 = vadd.f32 %v44_v15, %v43_v13 }
  0x17   :  { %v39_v18 = vrot.slane %v38_v16, 1  ;;  %v46_v19 = vrot.slane %v45_v17, 1 }
  0x19   :  { %v40_v20 = vadd.f32 %v39_v18, %v38_v16  ;;  %v47_v21 = vadd.f32 %v46_v19, %v45_v17 }
  0x1b   :  { %v51_v22 = vsel %vm50_vm2, %v47_v21, %v40_v20 }
  0x1c   :  { %54 = vst.msk [vmem:[#allocation5] sm:$0x3] %vm53_vm3, %v51_v22 }
  0x1d   :  { %65 = dma.vmem_to_hbm [thread:$0]  %s61_s13, 32, %s63_s16, [#allocation4]  }
  0x1e   :  { %127 = dma.done.wait [#allocation4], 32  }
  0x1f   :  { %128 = vsyncadd [#allocation4], 4294967264 }
  0x20   :  { %70 = vsyncpa [#allocation3], 1 }
  0x21   :  { %71 = vsyncpa [#allocation4], 1 }

</bundles_post_ra>
